<compile_context>
chip_gen: v6e
topology: v6e:2x2x1
jax: 0.10.0
libtpu: 0.0.40
codegen_flags: <defaults>
</compile_context>

<pallas_src>
import functools

import jax
import jax.numpy as jnp
from jax.experimental import pallas as pl
from jax.experimental.pallas import tpu as pltpu


def _round_up(n, m):
    return ((n + m - 1) // m) * m


def _cdiv(a, b):
    return -(-a // b)


def _mlp_kernel(x_ref, w_ref, b_ref, z_ref, *, num_layers, lat_w):
    """One folded batch tile through the whole MLP.

    x_ref : (tile_f, D)       f32   folded activations (D = fold * d lanes)
    w_ref : (NL, D, D)        bf16  block-diagonal weight slab (resident)
    b_ref : (NL, 1, D)        f32   tiled bias slab (resident)
    z_ref : (tile_f, lat_w)   f32   compacted latent output
    """
    h = x_ref[...].astype(jnp.bfloat16)          # in-kernel cast (VPU), after DMA
    for l in range(num_layers):                  # static unrolled (NL == 4)
        acc = jnp.dot(h, w_ref[l], preferred_element_type=jnp.float32)
        if l < num_layers - 1:
            # f32 bias + ReLU (v5e has no bf16 VPU), back to bf16 for the MXU.
            h = jnp.maximum(acc + b_ref[l], 0.0).astype(jnp.bfloat16)
        else:
            zc = acc[:, :lat_w] + b_ref[l][:, :lat_w]
            z_ref[...] = jax.nn.sigmoid(zc).astype(z_ref.dtype)


def pack_params(params, d, fold, latent_dim):
    """Pack per-layer (W:(din,dout), b:(dout,)) into block-diagonal slabs.

    Hidden layers: fold copies of W (zero-padded to (d,d)) on the diagonal.
    Last layer:    fold copies of W placed so the latent vectors of the fold
                   batch rows land compacted in the first fold*latent lanes.
    """
    nl = len(params)
    D = d * fold
    w_slab = jnp.zeros((nl, D, D), jnp.bfloat16)
    b_slab = jnp.zeros((nl, 1, D), jnp.float32)
    for l, (w, b) in enumerate(params):
        din, dout = w.shape
        w_bf = w.astype(jnp.bfloat16)
        b_f = b.reshape(-1).astype(jnp.float32)
        for c in range(fold):
            if l < nl - 1:
                w_slab = w_slab.at[l, c * d:c * d + din, c * d:c * d + dout].set(w_bf)
                b_slab = b_slab.at[l, 0, c * d:c * d + dout].set(b_f)
            else:  # compacting last layer: dout == latent_dim
                w_slab = w_slab.at[l, c * d:c * d + din,
                                   c * latent_dim:c * latent_dim + dout].set(w_bf)
                b_slab = b_slab.at[l, 0, c * latent_dim:c * latent_dim + dout].set(b_f)
    return w_slab, b_slab


def multilayer_forward(x, params, latent_dim, *, tile_b=32768):
    """Returns [d, z] exactly like MultiLayer.forward (decode is identity)."""
    batch, in_ch = x.shape
    num_layers = len(params)

    # Padded per-row feature width (>= all layer dims for this module).
    d = max([in_ch, latent_dim] + [w.shape[1] for (w, _) in params])
    fold = 128 // d if (d < 128 and 128 % d == 0) else 1   # rows packed per lane-row
    D = d * fold
    lat_w = latent_dim * fold

    w_slab, b_slab = pack_params(params, d, fold, latent_dim)

    # --- prepare x (no full-array pass in the common case) ---
    x_in = x
    if in_ch < d:                       # not hit for this config (in_ch == d)
        x_in = jnp.pad(x_in, ((0, 0), (0, d - in_ch)))
    batch_p = _round_up(batch, fold)
    if batch_p != batch:                # only for batch % fold != 0
        x_in = jnp.pad(x_in, ((0, batch_p - batch), (0, 0)))
    n_f = batch_p // fold
    x_f = x_in.reshape(n_f, D)          # contiguity-preserving -> bitcast, free

    # --- balanced folded-row tiling (cdiv grid, ragged tail handled by OOB reads) ---
    tile_f_max = max(8, tile_b // fold)
    if n_f <= tile_f_max and n_f < 1024:
        tile_f, grid_n = n_f, 1                      # tiny batch: single full block
    else:
        grid_n = max(_cdiv(n_f, tile_f_max), 2)      # >=2 steps -> both v7x TCs busy
        tile_f = _round_up(_cdiv(n_f, grid_n), 8)
        grid_n = _cdiv(n_f, tile_f)
    out_rows = grid_n * tile_f                       # output writes stay in-bounds

    kernel = functools.partial(_mlp_kernel, num_layers=num_layers, lat_w=lat_w)

    cost = pl.CostEstimate(
        flops=2 * out_rows * num_layers * D * D,
        transcendentals=out_rows * lat_w,
        bytes_accessed=(out_rows * D * 4          # x in (f32)
                        + out_rows * lat_w * 4    # z out (f32)
                        + w_slab.size * 2 + b_slab.size * 4),
    )

    z_fold = pl.pallas_call(
        kernel,
        out_shape=jax.ShapeDtypeStruct((out_rows, lat_w), jnp.float32),
        grid_spec=pltpu.PrefetchScalarGridSpec(
            num_scalar_prefetch=0,
            grid=(grid_n,),
            in_specs=[
                # x: streamed one folded batch tile per grid step (lane-dense).
                pl.BlockSpec((tile_f, D), lambda i: (i, 0)),
                # weight / bias slabs: constant index map -> VMEM-resident.
                pl.BlockSpec((num_layers, D, D), lambda i: (0, 0, 0)),
                pl.BlockSpec((num_layers, 1, D), lambda i: (0, 0, 0)),
            ],
            out_specs=pl.BlockSpec((tile_f, lat_w), lambda i: (i, 0)),
        ),
        compiler_params=pltpu.CompilerParams(
            dimension_semantics=("parallel",),       # megacore split on v7x
            vmem_limit_bytes=40 * 1024 * 1024,       # big tiles; v5e default is 16 MiB
        ),
        cost_estimate=cost,
    )(x_f, w_slab, b_slab)

    # Un-fold: (n_f, fold*latent) -> (batch_p, latent) is again a free bitcast.
    z = z_fold[:n_f].reshape(n_f * fold, latent_dim)[:batch]
    d_out = z  # decode(z) == z
    return [d_out, z]


def make_params(key, in_channels=32, latent_dim=8, size=4):
    """Deterministic Linear params. Shapes follow the PyTorch module."""
    dims = [int(in_channels - i * (in_channels - 8) / (size - 1)) for i in range(size)]
    layer_dims = list(zip(dims[:-1], dims[1:])) + [(dims[-1], latent_dim)]
    params = []
    for (din, dout) in layer_dims:
        key, kw, kb = jax.random.split(key, 3)
        bound = 1.0 / float(jnp.sqrt(din))  # mimic nn.Linear default init range
        w = jax.random.uniform(kw, (din, dout), jnp.float32, -bound, bound)
        b = jax.random.uniform(kb, (dout,), jnp.float32, -bound, bound)
        params.append((w, b))
    return params, dims


def reference_forward(x, params):
    """Pure-JAX f32 reference of the PyTorch forward (eval mode)."""
    h = x
    n = len(params)
    for i, (w, b) in enumerate(params):
        h = h @ w + b
        if i < n - 1:
            h = jnp.maximum(h, 0.0)
        else:
            h = jax.nn.sigmoid(h)
    return [h, h]


if __name__ == "__main__":
    key = jax.random.PRNGKey(0)
    key, kx = jax.random.split(key)

    in_channels = 32
    latent_dim = 8
    size = 4
    batch = 64  # small example; the kernel tiles/streams arbitrary batch sizes

    params, dims = make_params(key, in_channels, latent_dim, size)
    x = jax.random.normal(kx, (batch, in_channels), jnp.float32)

    d, z = multilayer_forward(x, params, latent_dim)
    jax.block_until_ready(d)
    jax.block_until_ready(z)

    d_ref, z_ref = reference_forward(x, params)

    assert d.shape == (batch, latent_dim)
    assert z.shape == (batch, latent_dim)
    assert bool(jnp.all(d == z))                      # decode == identity
    assert bool(jnp.all((z >= 0.0) & (z <= 1.0)))     # sigmoid range
    # bf16 MXU inputs + f32 accumulation: tight agreement with f32 reference.
    assert float(jnp.max(jnp.abs(z - z_ref))) < 2e-2

    print("KERNEL_OK")
</pallas_src>

<mosaic_0001>
module attributes {stable_mosaic.version = 11 : i64} {
  func.func @_mlp_kernel(%arg0: i32, %arg1: memref<16x128xf32, #tpu.memory_space<vmem>>, %arg2: memref<4x128x128xbf16, #tpu.memory_space<vmem>>, %arg3: memref<4x1x128xf32, #tpu.memory_space<vmem>>, %arg4: memref<16x32xf32, #tpu.memory_space<vmem>>) attributes {dimension_semantics = [#tpu.dimension_semantics<parallel>], iteration_bounds = array<i64: 1>, scalar_prefetch = 0 : i64, scratch_operands = 0 : i64, tpu.core_type = #tpu.core_type<tc>, window_params = [{transform_indices = @transform_0, window_bounds = array<i64: 16, 128>}, {pipeline_mode = #tpu.pipeline_mode<synchronous>, transform_indices = @transform_1, window_bounds = array<i64: 4, 128, 128>}, {pipeline_mode = #tpu.pipeline_mode<synchronous>, transform_indices = @transform_2, window_bounds = array<i64: 4, 1, 128>}, {transform_indices = @transform_3, window_bounds = array<i64: 16, 32>}]} {
    %c0 = arith.constant 0 : index
    %c0_0 = arith.constant 0 : index
    %0 = vector.load %arg1[%c0, %c0_0] : memref<16x128xf32, #tpu.memory_space<vmem>>, vector<16x128xf32>
    %1 = arith.truncf %0 : vector<16x128xf32> to vector<16x128xbf16>
    %c0_1 = arith.constant 0 : index
    %c0_2 = arith.constant 0 : index
    %c0_3 = arith.constant 0 : index
    %2 = vector.load %arg2[%c0_1, %c0_2, %c0_3] : memref<4x128x128xbf16, #tpu.memory_space<vmem>>, vector<1x128x128xbf16>
    %3 = vector.shape_cast %2 : vector<1x128x128xbf16> to vector<128x128xbf16>
    %cst = arith.constant dense<0.000000e+00> : vector<16x128xf32>
    %4 = tpu.matmul %1, %3, %cst {dimension_numbers = #tpu.dot_dimension_numbers<[1], [0], [0], [1], [0, 0, 1, 1], [], []>} : vector<16x128xbf16>, vector<128x128xbf16>, vector<16x128xf32> -> vector<16x128xf32>
    %c0_4 = arith.constant 0 : index
    %c0_5 = arith.constant 0 : index
    %c0_6 = arith.constant 0 : index
    %5 = vector.load %arg3[%c0_4, %c0_5, %c0_6] : memref<4x1x128xf32, #tpu.memory_space<vmem>>, vector<1x1x128xf32>
    %6 = vector.shape_cast %5 : vector<1x1x128xf32> to vector<1x128xf32>
    %7 = vector.broadcast %6 : vector<1x128xf32> to vector<16x128xf32>
    %8 = arith.addf %4, %7 : vector<16x128xf32>
    %cst_7 = arith.constant 0.000000e+00 : f32
    %9 = vector.broadcast %cst_7 : f32 to vector<16x128xf32>
    %10 = arith.maximumf %8, %9 : vector<16x128xf32>
    %11 = arith.truncf %10 : vector<16x128xf32> to vector<16x128xbf16>
    %c1 = arith.constant 1 : index
    %c0_8 = arith.constant 0 : index
    %c0_9 = arith.constant 0 : index
    %12 = vector.load %arg2[%c1, %c0_8, %c0_9] : memref<4x128x128xbf16, #tpu.memory_space<vmem>>, vector<1x128x128xbf16>
    %13 = vector.shape_cast %12 : vector<1x128x128xbf16> to vector<128x128xbf16>
    %cst_10 = arith.constant dense<0.000000e+00> : vector<16x128xf32>
    %14 = tpu.matmul %11, %13, %cst_10 {dimension_numbers = #tpu.dot_dimension_numbers<[1], [0], [0], [1], [0, 0, 1, 1], [], []>} : vector<16x128xbf16>, vector<128x128xbf16>, vector<16x128xf32> -> vector<16x128xf32>
    %c1_11 = arith.constant 1 : index
    %c0_12 = arith.constant 0 : index
    %c0_13 = arith.constant 0 : index
    %15 = vector.load %arg3[%c1_11, %c0_12, %c0_13] : memref<4x1x128xf32, #tpu.memory_space<vmem>>, vector<1x1x128xf32>
    %16 = vector.shape_cast %15 : vector<1x1x128xf32> to vector<1x128xf32>
    %17 = vector.broadcast %16 : vector<1x128xf32> to vector<16x128xf32>
    %18 = arith.addf %14, %17 : vector<16x128xf32>
    %cst_14 = arith.constant 0.000000e+00 : f32
    %19 = vector.broadcast %cst_14 : f32 to vector<16x128xf32>
    %20 = arith.maximumf %18, %19 : vector<16x128xf32>
    %21 = arith.truncf %20 : vector<16x128xf32> to vector<16x128xbf16>
    %c2 = arith.constant 2 : index
    %c0_15 = arith.constant 0 : index
    %c0_16 = arith.constant 0 : index
    %22 = vector.load %arg2[%c2, %c0_15, %c0_16] : memref<4x128x128xbf16, #tpu.memory_space<vmem>>, vector<1x128x128xbf16>
    %23 = vector.shape_cast %22 : vector<1x128x128xbf16> to vector<128x128xbf16>
    %cst_17 = arith.constant dense<0.000000e+00> : vector<16x128xf32>
    %24 = tpu.matmul %21, %23, %cst_17 {dimension_numbers = #tpu.dot_dimension_numbers<[1], [0], [0], [1], [0, 0, 1, 1], [], []>} : vector<16x128xbf16>, vector<128x128xbf16>, vector<16x128xf32> -> vector<16x128xf32>
    %c2_18 = arith.constant 2 : index
    %c0_19 = arith.constant 0 : index
    %c0_20 = arith.constant 0 : index
    %25 = vector.load %arg3[%c2_18, %c0_19, %c0_20] : memref<4x1x128xf32, #tpu.memory_space<vmem>>, vector<1x1x128xf32>
    %26 = vector.shape_cast %25 : vector<1x1x128xf32> to vector<1x128xf32>
    %27 = vector.broadcast %26 : vector<1x128xf32> to vector<16x128xf32>
    %28 = arith.addf %24, %27 : vector<16x128xf32>
    %cst_21 = arith.constant 0.000000e+00 : f32
    %29 = vector.broadcast %cst_21 : f32 to vector<16x128xf32>
    %30 = arith.maximumf %28, %29 : vector<16x128xf32>
    %31 = arith.truncf %30 : vector<16x128xf32> to vector<16x128xbf16>
    %c3 = arith.constant 3 : index
    %c0_22 = arith.constant 0 : index
    %c0_23 = arith.constant 0 : index
    %32 = vector.load %arg2[%c3, %c0_22, %c0_23] : memref<4x128x128xbf16, #tpu.memory_space<vmem>>, vector<1x128x128xbf16>
    %33 = vector.shape_cast %32 : vector<1x128x128xbf16> to vector<128x128xbf16>
    %cst_24 = arith.constant dense<0.000000e+00> : vector<16x128xf32>
    %34 = tpu.matmul %31, %33, %cst_24 {dimension_numbers = #tpu.dot_dimension_numbers<[1], [0], [0], [1], [0, 0, 1, 1], [], []>} : vector<16x128xbf16>, vector<128x128xbf16>, vector<16x128xf32> -> vector<16x128xf32>
    %35 = vector.extract_strided_slice %34 {offsets = [0, 0], sizes = [16, 32], strides = [1, 1]} : vector<16x128xf32> to vector<16x32xf32>
    %c3_25 = arith.constant 3 : index
    %c0_26 = arith.constant 0 : index
    %c0_27 = arith.constant 0 : index
    %36 = vector.load %arg3[%c3_25, %c0_26, %c0_27] : memref<4x1x128xf32, #tpu.memory_space<vmem>>, vector<1x1x128xf32>
    %37 = vector.shape_cast %36 : vector<1x1x128xf32> to vector<1x128xf32>
    %38 = vector.extract_strided_slice %37 {offsets = [0, 0], sizes = [1, 32], strides = [1, 1]} : vector<1x128xf32> to vector<1x32xf32>
    %39 = vector.broadcast %38 : vector<1x32xf32> to vector<16x32xf32>
    %40 = arith.addf %35, %39 : vector<16x32xf32>
    %41 = arith.negf %40 : vector<16x32xf32>
    %42 = math.exp %41 : vector<16x32xf32>
    %cst_28 = arith.constant 1.000000e+00 : f32
    %43 = vector.broadcast %cst_28 : f32 to vector<16x32xf32>
    %44 = arith.addf %43, %42 : vector<16x32xf32>
    %45 = arith.divf %43, %44 : vector<16x32xf32>
    %c0_29 = arith.constant 0 : index
    %c0_30 = arith.constant 0 : index
    %46 = vector.load %arg4[%c0_29, %c0_30] : memref<16x32xf32, #tpu.memory_space<vmem>>, vector<16x32xf32>
    tpu.vector_store %arg4[%c0_29, %c0_30], %45 {strides = array<i32>} : memref<16x32xf32, #tpu.memory_space<vmem>>, vector<16x32xf32>,
    return
  }
  func.func @transform_0(%arg0: i32) -> (i32, i32) {
    %c0_i32 = arith.constant 0 : i32
    %c0_i32_0 = arith.constant 0 : i32
    return %arg0, %c0_i32 : i32, i32
  }
  func.func @transform_1(%arg0: i32) -> (i32, i32, i32) {
    %c0_i32 = arith.constant 0 : i32
    %c0_i32_0 = arith.constant 0 : i32
    %c0_i32_1 = arith.constant 0 : i32
    %c0_i32_2 = arith.constant 0 : i32
    return %c0_i32, %c0_i32_0, %c0_i32_1 : i32, i32, i32
  }
  func.func @transform_2(%arg0: i32) -> (i32, i32, i32) {
    %c0_i32 = arith.constant 0 : i32
    %c0_i32_0 = arith.constant 0 : i32
    %c0_i32_1 = arith.constant 0 : i32
    %c0_i32_2 = arith.constant 0 : i32
    return %c0_i32, %c0_i32_0, %c0_i32_1 : i32, i32, i32
  }
  func.func @transform_3(%arg0: i32) -> (i32, i32) {
    %c0_i32 = arith.constant 0 : i32
    %c0_i32_0 = arith.constant 0 : i32
    return %arg0, %c0_i32 : i32, i32
  }
}

</mosaic_0001>

<bundles_post_ra>
// kernel: tpu_custom_call.1
= control target key start
LH: loop header
LB: loop body
LE: loop exit
PB: predicated region body
PF: predicated region fallthrough
CT: control target
= control target key end

     0   :  { %8 = vsyncpa [#allocation3], 0  ;;  %s940_s0 = inlined_call_operand.hbm [shape: f32[16,128], index: 0, kind: input, shape index: {}]   ;;  %s941_s1 = inlined_call_operand.hbm [shape: bf16[4,128,128], index: 1, kind: input, shape index: {}]   ;;  %s942_s2 = inlined_call_operand.hbm [shape: f32[4,1,128], index: 2, kind: input, shape index: {}]   ;;  %s943_s3 = inlined_call_operand.hbm [shape: f32[16,32], index: 3, kind: output, shape index: {}]  }
   0x1   :  { %9 = vsyncpa [#allocation6], 0 }
   0x2   :  { %10 = vsyncpa [#allocation4], 0  ;;  %s850_s12 = smov [#allocation5]  }
   0x3   :  { %s28_s13 = sshll.u32 %s850_s12, 4  ;;  %s29_s13 = int_to_ptr.vmem [resolvable:$true] %s28_s13 }
   0x4   :  { %s772_s14 = scalar_lea.vmem %s29_s13, 4096  ;;  %p777_p1 = scmp.lt.s32.totalorder %s29_s13, %s29_s13 }
   0x5   :  { %p773_p0 = scmp.ne.s32.totalorder %s29_s13, %s772_s14  ;;  %p778_p2 = scmp.lt.s32.totalorder %s772_s14, %s772_s14 }
   0x7   :  { %p779_p3 = por %p778_p2, %p777_p1 }
   0x9   :  { %p780_p4 = pnand %p779_p3, %p773_p0 }
   0xb   :  { %783 = shalt.err (!%p780_p4)
}
   0xc   :  { %s851_s15 = smov 64   ;;  %s852_s16 = smov 4  }
   0xd   :  { %34 = dma.hbm_to_vmem [thread:$0]  %s941_s1, 4096, %s29_s13, [#allocation6], %s851_s15, %s851_s15, %s852_s16  }
   0xe   :  { %s853_s19 = smov [#allocation2]  }
   0xf   :  { %s16_s20 = sshll.u32 %s853_s19, 4  ;;  %s17_s20 = int_to_ptr.vmem [resolvable:$true] %s16_s20 }
  0x10   :  { %s792_s21 = scalar_lea.vmem %s17_s20, 256  ;;  %p797_p6 = scmp.lt.s32.totalorder %s17_s20, %s17_s20 }
  0x11   :  { %p793_p5 = scmp.ne.s32.totalorder %s17_s20, %s792_s21  ;;  %p798_p7 = scmp.lt.s32.totalorder %s792_s21, %s792_s21 }
  0x13   :  { %p799_p8 = por %p798_p7, %p797_p6 }
  0x15   :  { %p800_p9 = pnand %p799_p8, %p793_p5 }
  0x17   :  { %803 = shalt.err (!%p800_p9)
}
  0x18   :  { %s854_s22 = smov 128   ;;  %s855_s23 = smov 8  }
  0x19   :  { %22 = dma.hbm_to_vmem [thread:$0]  %s940_s0, 256, %s17_s20, [#allocation3], %s854_s22, %s854_s22, %s855_s23  }
  0x1a   :  { %s856_s1 = smov [#allocation7]  }
  0x1b   :  { %s40_s26 = sshll.u32 %s856_s1, 4  ;;  %s41_s26 = int_to_ptr.vmem [resolvable:$true] %s40_s26 }
  0x1c   :  { %s812_s27 = scalar_lea.vmem %s41_s26, 64  ;;  %p817_p11 = scmp.lt.s32.totalorder %s41_s26, %s41_s26 }
  0x1d   :  { %p813_p10 = scmp.ne.s32.totalorder %s41_s26, %s812_s27  ;;  %p818_p12 = scmp.lt.s32.totalorder %s812_s27, %s812_s27 }
  0x1f   :  { %p819_p13 = por %p818_p12, %p817_p11 }
  0x21   :  { %p820_p0 = pnand %p819_p13, %p813_p10 }
  0x23   :  { %823 = shalt.err (!%p820_p0)
}
  0x24   :  { %s857_s28 = smov 16   ;;  %s858_s29 = smov 1  }
  0x25   :  { %46 = dma.hbm_to_vmem [thread:$0]  %s942_s2, 64, %s41_s26, [#allocation6], %s857_s28, %s857_s28, %s858_s29  }
  0x26   :  { %844 = dma.done.wait [#allocation3], 256  }
  0x27   :  { %845 = vsyncadd [#allocation3], 4294967040 }
  0x28   :  { %846 = dma.done.wait [#allocation6], 4160  }
  0x29   :  { %847 = vsyncadd [#allocation6], 4294963136  ;;  %v859_v0 = vmov 0.0   ;;  %vm860_vm0 = vmmov 0   ;;  %v724_v1 = vld [vmem:[#allocation5 + $0x38] sm:$0xff]   ;;  %v725_v2 = vld [vmem:[#allocation5 + $0x30] sm:$0xff]  }
  0x2a   :  { %632 = vmatprep.subr.bf16.mxu0 %v859_v0  ;;  %648 = vmatprep.mubr.msk.bf16.mxu0 %vm860_vm0, %v859_v0  ;;  %v726_v3 = vld [vmem:[#allocation5 + $0x28] sm:$0xff]   ;;  %v732_v4 = vld [vmem:[#allocation5 + $0x78] sm:$0xff]   ;;  %v727_v5 = vld [vmem:[#allocation5 + $0x20] sm:$0xff]   ;;  %vm537_vm1 = vcmask 261120   ;;  %s861_s0 = smov [#allocation8]  }
  0x2b   :  { %652 = vmatprep.subr.bf16.mxu1 %v859_v0  ;;  %668 = vmatprep.mubr.msk.bf16.mxu1 %vm860_vm0, %v859_v0  ;;  %v733_v6 = vld [vmem:[#allocation5 + $0x70] sm:$0xff]   ;;  %v728_v7 = vld [vmem:[#allocation5 + $0x18] sm:$0xff]   ;;  %v734_v8 = vld [vmem:[#allocation5 + $0x68] sm:$0xff]   ;;  %s545_s2 = sshll.u32 %s861_s0, 4  ;;  %s546_s2 = int_to_ptr.vmem [resolvable:$true] %s545_s2 }
  0x2c   :  { %633 = vmatpush3.bf16.msra.mxu0 %v724_v1  ;;  %653 = vmatpush3.bf16.msra.mxu1 %v732_v4  ;;  %v729_v9 = vld [vmem:[#allocation5 + $0x10] sm:$0xff]   ;;  %v735_v10 = vld [vmem:[#allocation5 + $0x60] sm:$0xff]   ;;  %v730_v11 = vld [vmem:[#allocation5 + $0x8] sm:$0xff]   ;;  %s824_s5 = scalar_lea.vmem %s546_s2, 256  ;;  %p829_p2 = scmp.lt.s32.totalorder %s546_s2, %s546_s2 }
  0x2d   :  { %634 = vmatprep.subr.bf16.mxu0 %v859_v0  ;;  %654 = vmatprep.subr.bf16.mxu1 %v859_v0  ;;  %v736_v12 = vld [vmem:[#allocation5 + $0x58] sm:$0xff]   ;;  %v731_v13 = vld [vmem:[#allocation5] sm:$0xff]   ;;  %v57_v14 = vld [vmem:[#allocation2] sm:$0xff]  ;;  %p825_p1 = scmp.ne.s32.totalorder %s546_s2, %s824_s5  ;;  %p830_p3 = scmp.lt.s32.totalorder %s824_s5, %s824_s5 }
  0x2e   :  { %v58_v15 = vld [vmem:[#allocation2 + $0x8] sm:$0xff]  ;;  %v737_v17 = vld [vmem:[#allocation5 + $0x50] sm:$0xff]   ;;  %v738_v18 = vld [vmem:[#allocation5 + $0x48] sm:$0xff]  }
  0x2f   :  { %v59_v16 = vpack.c.bf16 %v58_v15, %v57_v14  ;;  %v739_v19 = vld [vmem:[#allocation5 + $0x40] sm:$0xff]   ;;  %v740_v20 = vld [vmem:[#allocation5 + $0xb8] sm:$0xff]   ;;  %v741_v21 = vld [vmem:[#allocation5 + $0xb0] sm:$0xff]   ;;  %p831_p4 = por %p830_p3, %p829_p2 }
  0x30   :  { %635 = vmatpush3.bf16.msra.mxu0 %v725_v2  ;;  %655 = vmatpush3.bf16.msra.mxu1 %v733_v6  ;;  %v742_v22 = vld [vmem:[#allocation5 + $0xa8] sm:$0xff]   ;;  %v743_v23 = vld [vmem:[#allocation5 + $0xa0] sm:$0xff]   ;;  %v744_v24 = vld [vmem:[#allocation5 + $0x98] sm:$0xff]  }
  0x31   :  { %636 = vmatprep.subr.bf16.mxu0 %v859_v0  ;;  %656 = vmatprep.subr.bf16.mxu1 %v859_v0  ;;  %v558_v25 = vld [vmem:[#allocation7] ss:$0 sm:$0xff]  ;;  %v745_v35 = vld [vmem:[#allocation5 + $0x90] sm:$0xff]   ;;  %v746_v36 = vld [vmem:[#allocation5 + $0x88] sm:$0xff]   ;;  %p832_p5 = pnand %p831_p4, %p825_p1 }
  0x32   :  { %v747_v37 = vld [vmem:[#allocation5 + $0x80] sm:$0xff]   ;;  %v748_v38 = vld [vmem:[#allocation5 + $0xf8] sm:$0xff]   ;;  %v749_v39 = vld [vmem:[#allocation5 + $0xf0] sm:$0xff]  }
  0x33   :  { %v750_v40 = vld [vmem:[#allocation5 + $0xe8] sm:$0xff]   ;;  %v751_v41 = vld [vmem:[#allocation5 + $0xe0] sm:$0xff]   ;;  %v752_v42 = vld [vmem:[#allocation5 + $0xd8] sm:$0xff]  }
  0x34   :  { %637 = vmatpush3.bf16.msra.mxu0 %v726_v3  ;;  %657 = vmatpush3.bf16.msra.mxu1 %v734_v8  ;;  %v567_v43 = vld [vmem:[#allocation7 + $0x1] ss:$0 sm:$0xff]  ;;  %v753_v53 = vld [vmem:[#allocation5 + $0xd0] sm:$0xff]   ;;  %v754_v54 = vld [vmem:[#allocation5 + $0xc8] sm:$0xff]  }
  0x35   :  { %638 = vmatprep.subr.bf16.mxu0 %v859_v0  ;;  %658 = vmatprep.subr.bf16.mxu1 %v859_v0  ;;  %v755_v55 = vld [vmem:[#allocation5 + $0xc0] sm:$0xff]  }
  0x36   :  { %v576_v56 = vld [vmem:[#allocation7 + $0x2] ss:$0 sm:$0xff]  ;;  %v593_v3 = vld [vmem:[#allocation7 + $0x3] ss:$0 sm:$0xff] }
  0x38   :  { %639 = vmatpush3.bf16.msra.mxu0 %v727_v5  ;;  %659 = vmatpush3.bf16.msra.mxu1 %v735_v10 }
  0x39   :  { %640 = vmatprep.subr.bf16.mxu0 %v859_v0  ;;  %660 = vmatprep.subr.bf16.mxu1 %v859_v0 }
  0x3c   :  { %641 = vmatpush3.bf16.msra.mxu0 %v728_v7  ;;  %661 = vmatpush3.bf16.msra.mxu1 %v736_v12 }
  0x3d   :  { %642 = vmatprep.subr.bf16.mxu0 %v859_v0  ;;  %662 = vmatprep.subr.bf16.mxu1 %v859_v0 }
  0x40   :  { %643 = vmatpush3.bf16.msra.mxu0 %v729_v9  ;;  %663 = vmatpush3.bf16.msra.mxu1 %v737_v17 }
  0x41   :  { %644 = vmatprep.subr.bf16.mxu0 %v859_v0  ;;  %664 = vmatprep.subr.bf16.mxu1 %v859_v0 }
  0x44   :  { %645 = vmatpush3.bf16.msra.mxu0 %v730_v11  ;;  %665 = vmatpush3.bf16.msra.mxu1 %v738_v18 }
  0x45   :  { %646 = vmatprep.subr.bf16.mxu0 %v859_v0  ;;  %666 = vmatprep.subr.bf16.mxu1 %v859_v0 }
  0x48   :  { %647 = vmatpush3.bf16.msra.mxu0 %v731_v13  ;;  %667 = vmatpush3.bf16.msra.mxu1 %v739_v19 }
  0x49   :  { %672 = vmatprep.subr.bf16.mxu0 %v859_v0  ;;  %692 = vmatprep.subr.bf16.mxu1 %v859_v0 }
  0x4b   :  { %649 = vmatmul.mubr.bf16.vlgmr.msra.gmra.mxu0 %v59_v16 }
  0x4c   :  { %688 = vmatprep.mubr.msk.bf16.mxu0 %vm860_vm0, %v859_v0  ;;  %673 = vmatpush3.bf16.msra.mxu0 %v740_v20 }
  0x4d   :  { %674 = vmatprep.subr.bf16.mxu0 %v859_v0 }
  0x50   :  { %675 = vmatpush3.bf16.msra.mxu0 %v741_v21 }
  0x51   :  { %676 = vmatprep.subr.bf16.mxu0 %v859_v0 }
  0x54   :  { %677 = vmatpush3.bf16.msra.mxu0 %v742_v22 }
  0x55   :  { %678 = vmatprep.subr.bf16.mxu0 %v859_v0 }
  0x58   :  { %679 = vmatpush3.bf16.msra.mxu0 %v743_v23 }
  0x59   :  { %680 = vmatprep.subr.bf16.mxu0 %v859_v0 }
  0x5c   :  { %681 = vmatpush3.bf16.msra.mxu0 %v744_v24 }
  0x5d   :  { %682 = vmatprep.subr.bf16.mxu0 %v859_v0 }
  0x60   :  { %683 = vmatpush3.bf16.msra.mxu0 %v745_v35 }
  0x61   :  { %684 = vmatprep.subr.bf16.mxu0 %v859_v0 }
  0x64   :  { %685 = vmatpush3.bf16.msra.mxu0 %v746_v36 }
  0x65   :  { %686 = vmatprep.subr.bf16.mxu0 %v859_v0 }
  0x68   :  { %687 = vmatpush3.bf16.msra.mxu0 %v747_v37 }
 0x10b   :  { %v165_v26 = vpop.f32.mrf.mxu0 }
 0x10c   :  { %v166_v28 = vadd.f32 %v558_v25, %v165_v26 }
 0x10d   :  { %v650_v27 = vpop.f32.mrf.mxu0 }
 0x10e   :  { %v172_v32 = vmax.f32 %v166_v28, 0.0 }
 0x10f   :  { %v168_v29 = vpop.f32.mrf.mxu0 }
 0x110   :  { %v169_v30 = vadd.f32 %v558_v25, %v168_v29 }
 0x111   :  { %v651_v31 = vpop.f32.mrf.mxu0 }
 0x112   :  { %v173_v33 = vmax.f32 %v169_v30, 0.0 }
 0x114   :  { %v174_v34 = vpack.c.bf16 %v173_v33, %v172_v32 }
 0x116   :  { %669 = vmatmul.mubr.bf16.vlgmr.msra.gmra.mxu1 %v174_v34 }
 0x117   :  { %708 = vmatprep.mubr.msk.bf16.mxu1 %vm860_vm0, %v859_v0  ;;  %693 = vmatpush3.bf16.msra.mxu1 %v748_v38 }
 0x118   :  { %694 = vmatprep.subr.bf16.mxu1 %v859_v0 }
 0x11b   :  { %695 = vmatpush3.bf16.msra.mxu1 %v749_v39 }
 0x11c   :  { %696 = vmatprep.subr.bf16.mxu1 %v859_v0 }
 0x11f   :  { %697 = vmatpush3.bf16.msra.mxu1 %v750_v40 }
 0x120   :  { %698 = vmatprep.subr.bf16.mxu1 %v859_v0 }
 0x123   :  { %699 = vmatpush3.bf16.msra.mxu1 %v751_v41 }
 0x124   :  { %700 = vmatprep.subr.bf16.mxu1 %v859_v0 }
 0x127   :  { %701 = vmatpush3.bf16.msra.mxu1 %v752_v42 }
 0x128   :  { %702 = vmatprep.subr.bf16.mxu1 %v859_v0 }
 0x12b   :  { %703 = vmatpush3.bf16.msra.mxu1 %v753_v53 }
 0x12c   :  { %704 = vmatprep.subr.bf16.mxu1 %v859_v0 }
 0x12f   :  { %705 = vmatpush3.bf16.msra.mxu1 %v754_v54 }
 0x130   :  { %706 = vmatprep.subr.bf16.mxu1 %v859_v0 }
 0x133   :  { %707 = vmatpush3.bf16.msra.mxu1 %v755_v55 }
 0x1d6   :  { %v282_v44 = vpop.f32.mrf.mxu1 }
 0x1d7   :  { %v283_v46 = vadd.f32 %v567_v43, %v282_v44 }
 0x1d8   :  { %v670_v45 = vpop.f32.mrf.mxu1 }
 0x1d9   :  { %v289_v50 = vmax.f32 %v283_v46, 0.0 }
 0x1da   :  { %v285_v47 = vpop.f32.mrf.mxu1 }
 0x1db   :  { %v286_v48 = vadd.f32 %v567_v43, %v285_v47 }
 0x1dc   :  { %v671_v49 = vpop.f32.mrf.mxu1 }
 0x1dd   :  { %v290_v51 = vmax.f32 %v286_v48, 0.0 }
 0x1df   :  { %v291_v52 = vpack.c.bf16 %v290_v51, %v289_v50 }
 0x1e1   :  { %689 = vmatmul.mubr.bf16.vlgmr.msra.gmra.mxu0 %v291_v52 }
 0x2a1   :  { %v399_v57 = vpop.f32.mrf.mxu0 }
 0x2a2   :  { %v400_v59 = vadd.f32 %v576_v56, %v399_v57 }
 0x2a3   :  { %v690_v58 = vpop.f32.mrf.mxu0 }
 0x2a4   :  { %v406_v63 = vmax.f32 %v400_v59, 0.0 }
 0x2a5   :  { %v402_v60 = vpop.f32.mrf.mxu0 }
 0x2a6   :  { %v403_v61 = vadd.f32 %v576_v56, %v402_v60 }
 0x2a7   :  { %v691_v62 = vpop.f32.mrf.mxu0 }
 0x2a8   :  { %v407_v1 = vmax.f32 %v403_v61, 0.0 }
 0x2aa   :  { %v408_v2 = vpack.c.bf16 %v407_v1, %v406_v63 }
 0x2ac   :  { %709 = vmatmul.mubr.bf16.vlgmr.msra.gmra.mxu1 %v408_v2 }
 0x36c   :  { %v508_v4 = vpop.f32.mrf.mxu1 }
 0x36d   :  { %v523_v5 = vadd.f32 %v593_v3, %v508_v4 }
 0x36e   :  { %v710_v6 = vpop.f32.mrf.mxu1 }
 0x36f   :  { %v594_v7 = vmul.f32 -1.442695, %v523_v5 }
 0x370   :  { %v511_v8 = vpop.f32.mrf.mxu1 }
 0x371   :  { %756 = vpow2.f32 %v594_v7  ;;  %v524_v0 = vadd.f32 %v593_v3, %v511_v8 }
 0x372   :  { %v711_v9 = vpop.f32.mrf.mxu1 }
 0x373   :  { %v595_v10 = vmul.f32 -1.442695, %v524_v0 }
 0x375   :  { %758 = vpow2.f32 %v595_v10 }
 0x37e   :  { %v757_v11 = vpop.eup %756 }
 0x37f   :  { %v531_v12 = vadd.f32 1.0, %v757_v11 }
 0x381   :  { %760 = vrcp.f32 %v531_v12 }
 0x382   :  { %v759_v13 = vpop.eup %758 }
 0x383   :  { %v532_v14 = vadd.f32 1.0, %v759_v13 }
 0x385   :  { %762 = vrcp.f32 %v532_v14 }
 0x38e   :  { %v761_v15 = vpop.eup %760 }
 0x38f   :  { %538 = vst.msk [vmem:[#allocation8] sm:$0xff] %vm537_vm1, %v761_v15 }
 0x392   :  { %v763_v16 = vpop.eup %762 }
 0x393   :  { %539 = vst.msk [vmem:[#allocation8 + $0x8] sm:$0xff] %vm537_vm1, %v763_v16 }
 0x394   :  { %835 = shalt.err (!%p832_p5)
}
 0x395   :  { %551 = dma.vmem_to_hbm [thread:$0]  %s546_s2, 256, %s943_s3, [#allocation4], %s854_s22, %s854_s22, %s855_s23  }
 0x396   :  { %848 = dma.done.wait [#allocation4], 256  }
 0x397   :  { %849 = vsyncadd [#allocation4], 4294967040 }
 0x398   :  { %555 = vsyncpa [#allocation3], 1 }
 0x399   :  { %556 = vsyncpa [#allocation6], 1 }
 0x39a   :  { %557 = vsyncpa [#allocation4], 1 }

</bundles_post_ra>
